<compile_context>
chip_gen: v7x
topology: tpu7x:2x2x1
jax: 0.10.0
libtpu: 0.0.40
codegen_flags: <defaults>
</compile_context>

<pallas_src>
import jax
import jax.numpy as jnp
from jax import lax
from jax.experimental import pallas as pl
from jax.experimental.pallas import tpu as pltpu


def _self_attention_kernel(x_ref, w_ref, b_ref, o_ref):
    # x_ref: (bt, S, D_in) f32   w_ref: (D_in, 3H) bf16   b_ref: (1, 3H) f32
    # o_ref: (bt, S, H) f32
    bt, S, D_in = x_ref.shape
    H = o_ref.shape[-1]

    # ---- fused QKV projection: one (bt*S, D_in) x (D_in, 3H) MXU matmul ----
    x2d = x_ref[...].reshape(bt * S, D_in).astype(jnp.bfloat16)
    qkv = jnp.dot(x2d, w_ref[...], preferred_element_type=jnp.float32)
    qkv = (qkv + b_ref[...]).reshape(bt, S, 3 * H)

    # Pre-scale q by 1/8 (the PyTorch forward divides scores by the literal 8).
    # NOTE: at production widths, pad each projection to a 128-lane boundary
    # in the fused weight so these slices are lane-aligned; negligible at H=32.
    q = (qkv[:, :, 0 * H:1 * H] * 0.125).astype(jnp.bfloat16)
    k = qkv[:, :, 1 * H:2 * H].astype(jnp.bfloat16)
    v = qkv[:, :, 2 * H:3 * H].astype(jnp.bfloat16)

    # ---- attention scores: contract feature axis directly (no k.T) ---------
    scores = lax.dot_general(
        q, k,
        dimension_numbers=(((2,), (2,)), ((0,), (0,))),
        preferred_element_type=jnp.float32)              # (bt, S, S)

    # Numerically stable softmax over the last axis (dim=2 in PyTorch).
    # exp / reciprocal inputs stay f32 (v5e EUP/VPU have no bf16 path).
    scores = scores - jnp.max(scores, axis=-1, keepdims=True)
    p = jnp.exp(scores)
    inv_denom = pl.reciprocal(jnp.sum(p, axis=-1, keepdims=True), approx=True)

    if S <= H:
        # Normalize the smaller (S,S) tensor, then p @ v.
        p = (p * inv_denom).astype(jnp.bfloat16)
        out = lax.dot_general(
            p, v,
            dimension_numbers=(((2,), (1,)), ((0,), (0,))),
            preferred_element_type=jnp.float32)          # (bt, S, H)
    else:
        # Normalize the smaller (S,H) result instead of the (S,S) weights.
        out = lax.dot_general(
            p.astype(jnp.bfloat16), v,
            dimension_numbers=(((2,), (1,)), ((0,), (0,))),
            preferred_element_type=jnp.float32)          # (bt, S, H)
        out = out * inv_denom

    o_ref[...] = out.astype(o_ref.dtype)


def fuse_qkv_params(wq, bq, wk, bk, wv, bv):
    """Precompute the fused projection params ONCE (outside the forward path).

    Weight is stored bf16 so the per-call weight DMA is half-width; bias stays
    f32 (added to the f32 MXU accumulator).
    """
    w_qkv = jnp.concatenate([wq, wk, wv], axis=1).astype(jnp.bfloat16)  # (D_in, 3H)
    b_qkv = jnp.concatenate([bq, bk, bv], axis=1).astype(jnp.float32)   # (1, 3H)
    return w_qkv, b_qkv


def self_attention_fused(x, w_qkv, b_qkv, *, batch_block=None,
                         vmem_limit_bytes=64 << 20):
    """x: (B, S, D_in) f32; w_qkv: (D_in, 3H) bf16; b_qkv: (1, 3H) f32
    -> (B, S, H) f32."""
    B, S, D_in = x.shape
    H = w_qkv.shape[1] // 3

    if batch_block is None:
        # >= 2 grid steps so the "parallel" batch axis can shard across v7x's
        # two TensorCores (one extra tiny step is harmless on v5e/v6e, 1 TC).
        batch_block = max(1, pl.cdiv(B, 2)) if B > 1 else 1
        # VMEM-aware clamp: 2x double-buffered x block + 2x out block per
        # batch row, budgeted for v7x's 64 MiB physical VMEM (32 MiB scoped).
        per_batch_bytes = 2 * (S * D_in * 4) + 2 * (S * H * 4)
        budget = 24 << 20
        batch_block = max(1, min(batch_block, budget // max(per_batch_bytes, 1)))

    grid = (pl.cdiv(B, batch_block),)

    return pl.pallas_call(
        _self_attention_kernel,
        out_shape=jax.ShapeDtypeStruct((B, S, H), jnp.float32),
        grid_spec=pltpu.PrefetchScalarGridSpec(
            num_scalar_prefetch=0,
            grid=grid,
            in_specs=[
                pl.BlockSpec((batch_block, S, D_in), lambda i: (i, 0, 0)),
                pl.BlockSpec((D_in, 3 * H), lambda i: (0, 0)),   # fused bf16 weight
                pl.BlockSpec((1, 3 * H), lambda i: (0, 0)),      # fused f32 bias
            ],
            out_specs=pl.BlockSpec((batch_block, S, H), lambda i: (i, 0, 0)),
        ),
        compiler_params=pltpu.CompilerParams(
            dimension_semantics=("parallel",),
            vmem_limit_bytes=vmem_limit_bytes),
    )(x, w_qkv, b_qkv)


def self_attention(x, wq, bq, wk, bk, wv, bv, **kwargs):
    """Convenience wrapper; prefer fuse_qkv_params() once + self_attention_fused()."""
    w_qkv, b_qkv = fuse_qkv_params(wq, bq, wk, bk, wv, bv)
    return self_attention_fused(x, w_qkv, b_qkv, **kwargs)


def init_linear_params(key, in_features, out_features):
    """Deterministic init mimicking nn.Linear default (uniform +-1/sqrt(fan_in)).
    Weight stored as (in_features, out_features) so the kernel computes x @ W + b."""
    k_w, k_b = jax.random.split(key)
    bound = 1.0 / jnp.sqrt(in_features)
    w = jax.random.uniform(k_w, (in_features, out_features),
                           dtype=jnp.float32, minval=-bound, maxval=bound)
    b = jax.random.uniform(k_b, (1, out_features),
                           dtype=jnp.float32, minval=-bound, maxval=bound)
    return w, b


if __name__ == "__main__":
    batch, seq, input_size, hidden_size = 2, 8, 32, 32

    key = jax.random.PRNGKey(0)
    kx, kq, kk, kv = jax.random.split(key, 4)

    x = jax.random.normal(kx, (batch, seq, input_size), dtype=jnp.float32)
    wq, bq = init_linear_params(kq, input_size, hidden_size)
    wk, bk = init_linear_params(kk, input_size, hidden_size)
    wv, bv = init_linear_params(kv, input_size, hidden_size)

    # Fuse (and bf16-cast) the projection params ONCE, outside the forward path.
    w_qkv, b_qkv = fuse_qkv_params(wq, bq, wk, bk, wv, bv)
    w_qkv, b_qkv = jax.block_until_ready((w_qkv, b_qkv))

    out = self_attention_fused(x, w_qkv, b_qkv)
    jax.block_until_ready(out)

    # Pure-JAX float32 reference with PyTorch semantics. The kernel uses bf16
    # MXU operands (f32 accumulation) + approx reciprocal, so compare with a
    # correspondingly loosened tolerance.
    q = x @ wq + bq
    k = x @ wk + bk
    v = x @ wv + bv
    scores = jnp.einsum("bqd,bkd->bqk", q, k) / 8.0
    ref = jnp.einsum("bqk,bkd->bqd", jax.nn.softmax(scores, axis=2), v)

    assert out.shape == ref.shape
    max_err = float(jnp.max(jnp.abs(out - ref)))
    assert jnp.allclose(out, ref, atol=5e-2, rtol=5e-2), max_err

    print("KERNEL_OK")
</pallas_src>

<mosaic_0001>
module attributes {stable_mosaic.version = 11 : i64} {
  func.func @_self_attention_kernel(%arg0: i32, %arg1: memref<1x8x32xf32, #tpu.memory_space<vmem>>, %arg2: memref<32x96xbf16, #tpu.memory_space<vmem>>, %arg3: memref<1x96xf32, #tpu.memory_space<vmem>>, %arg4: memref<1x8x32xf32, #tpu.memory_space<vmem>>) attributes {dimension_semantics = [#tpu.dimension_semantics<parallel>], iteration_bounds = array<i64: 2>, scalar_prefetch = 0 : i64, scratch_operands = 0 : i64, tpu.core_type = #tpu.core_type<tc>, window_params = [{transform_indices = @transform_0, window_bounds = array<i64: 1, 8, 32>}, {pipeline_mode = #tpu.pipeline_mode<synchronous>, transform_indices = @transform_1, window_bounds = array<i64: 32, 96>}, {pipeline_mode = #tpu.pipeline_mode<synchronous>, transform_indices = @transform_2, window_bounds = array<i64: 1, 96>}, {transform_indices = @transform_3, window_bounds = array<i64: 1, 8, 32>}]} {
    %c0 = arith.constant 0 : index
    %c0_0 = arith.constant 0 : index
    %c0_1 = arith.constant 0 : index
    %0 = vector.load %arg1[%c0, %c0_0, %c0_1] : memref<1x8x32xf32, #tpu.memory_space<vmem>>, vector<1x8x32xf32>
    %1 = vector.shape_cast %0 : vector<1x8x32xf32> to vector<8x32xf32>
    %2 = arith.truncf %1 : vector<8x32xf32> to vector<8x32xbf16>
    %c0_2 = arith.constant 0 : index
    %c0_3 = arith.constant 0 : index
    %3 = vector.load %arg2[%c0_2, %c0_3] : memref<32x96xbf16, #tpu.memory_space<vmem>>, vector<32x96xbf16>
    %cst = arith.constant dense<0.000000e+00> : vector<8x96xf32>
    %4 = tpu.matmul %2, %3, %cst {dimension_numbers = #tpu.dot_dimension_numbers<[1], [0], [0], [1], [0, 0, 1, 1], [], []>} : vector<8x32xbf16>, vector<32x96xbf16>, vector<8x96xf32> -> vector<8x96xf32>
    %c0_4 = arith.constant 0 : index
    %c0_5 = arith.constant 0 : index
    %5 = vector.load %arg3[%c0_4, %c0_5] : memref<1x96xf32, #tpu.memory_space<vmem>>, vector<1x96xf32>
    %6 = vector.broadcast %5 : vector<1x96xf32> to vector<8x96xf32>
    %7 = arith.addf %4, %6 : vector<8x96xf32>
    %8 = vector.shape_cast %7 : vector<8x96xf32> to vector<1x8x96xf32>
    %9 = vector.extract_strided_slice %8 {offsets = [0, 0, 0], sizes = [1, 8, 32], strides = [1, 1, 1]} : vector<1x8x96xf32> to vector<1x8x32xf32>
    %cst_6 = arith.constant 1.250000e-01 : f32
    %10 = vector.broadcast %cst_6 : f32 to vector<1x8x32xf32>
    %11 = arith.mulf %9, %10 : vector<1x8x32xf32>
    %12 = arith.truncf %11 : vector<1x8x32xf32> to vector<1x8x32xbf16>
    %13 = vector.extract_strided_slice %8 {offsets = [0, 0, 32], sizes = [1, 8, 32], strides = [1, 1, 1]} : vector<1x8x96xf32> to vector<1x8x32xf32>
    %14 = arith.truncf %13 : vector<1x8x32xf32> to vector<1x8x32xbf16>
    %15 = vector.extract_strided_slice %8 {offsets = [0, 0, 64], sizes = [1, 8, 32], strides = [1, 1, 1]} : vector<1x8x96xf32> to vector<1x8x32xf32>
    %16 = arith.truncf %15 : vector<1x8x32xf32> to vector<1x8x32xbf16>
    %cst_7 = arith.constant dense<0.000000e+00> : vector<1x8x8xf32>
    %17 = tpu.matmul %12, %14, %cst_7 {dimension_numbers = #tpu.dot_dimension_numbers<[2], [2], [1], [1], [0, 0, 0, 1, 1, 1], [0], [0]>} : vector<1x8x32xbf16>, vector<1x8x32xbf16>, vector<1x8x8xf32> -> vector<1x8x8xf32>
    %cst_8 = arith.constant dense<0xFF800000> : vector<1x8xf32>
    %18 = vector.multi_reduction <maximumf>, %17, %cst_8 [2] : vector<1x8x8xf32> to vector<1x8xf32>
    %19 = vector.shape_cast %18 : vector<1x8xf32> to vector<1x8x1xf32>
    %20 = vector.broadcast %19 : vector<1x8x1xf32> to vector<1x8x8xf32>
    %21 = arith.subf %17, %20 : vector<1x8x8xf32>
    %22 = math.exp %21 : vector<1x8x8xf32>
    %cst_9 = arith.constant dense<0.000000e+00> : vector<1x8xf32>
    %23 = vector.multi_reduction <add>, %22, %cst_9 [2] : vector<1x8x8xf32> to vector<1x8xf32>
    %24 = vector.shape_cast %23 : vector<1x8xf32> to vector<1x8x1xf32>
    %25 = tpu.reciprocal %24 {approx = true} : vector<1x8x1xf32> -> vector<1x8x1xf32>
    %26 = vector.broadcast %25 : vector<1x8x1xf32> to vector<1x8x8xf32>
    %27 = arith.mulf %22, %26 : vector<1x8x8xf32>
    %28 = arith.truncf %27 : vector<1x8x8xf32> to vector<1x8x8xbf16>
    %cst_10 = arith.constant dense<0.000000e+00> : vector<1x8x32xf32>
    %29 = tpu.matmul %28, %16, %cst_10 {dimension_numbers = #tpu.dot_dimension_numbers<[2], [1], [1], [2], [0, 0, 0, 1, 1, 2], [0], [0]>} : vector<1x8x8xbf16>, vector<1x8x32xbf16>, vector<1x8x32xf32> -> vector<1x8x32xf32>
    %c0_11 = arith.constant 0 : index
    %c0_12 = arith.constant 0 : index
    %c0_13 = arith.constant 0 : index
    %30 = vector.load %arg4[%c0_11, %c0_12, %c0_13] : memref<1x8x32xf32, #tpu.memory_space<vmem>>, vector<1x8x32xf32>
    tpu.vector_store %arg4[%c0_11, %c0_12, %c0_13], %29 {strides = array<i32>} : memref<1x8x32xf32, #tpu.memory_space<vmem>>, vector<1x8x32xf32>,
    return
  }
  func.func @transform_0(%arg0: i32) -> (i32, i32, i32) {
    %c0_i32 = arith.constant 0 : i32
    %c0_i32_0 = arith.constant 0 : i32
    %c0_i32_1 = arith.constant 0 : i32
    return %arg0, %c0_i32, %c0_i32_0 : i32, i32, i32
  }
  func.func @transform_1(%arg0: i32) -> (i32, i32) {
    %c0_i32 = arith.constant 0 : i32
    %c0_i32_0 = arith.constant 0 : i32
    %c0_i32_1 = arith.constant 0 : i32
    return %c0_i32, %c0_i32_0 : i32, i32
  }
  func.func @transform_2(%arg0: i32) -> (i32, i32) {
    %c0_i32 = arith.constant 0 : i32
    %c0_i32_0 = arith.constant 0 : i32
    %c0_i32_1 = arith.constant 0 : i32
    return %c0_i32, %c0_i32_0 : i32, i32
  }
  func.func @transform_3(%arg0: i32) -> (i32, i32, i32) {
    %c0_i32 = arith.constant 0 : i32
    %c0_i32_0 = arith.constant 0 : i32
    %c0_i32_1 = arith.constant 0 : i32
    return %arg0, %c0_i32, %c0_i32_0 : i32, i32, i32
  }
}

</mosaic_0001>

<bundles_post_ra>
// kernel: tpu_custom_call.1
= control target key start
LH: loop header
LB: loop body
LE: loop exit
PB: predicated region body
PF: predicated region fallthrough
CT: control target
= control target key end

     0   :  { %8 = vsyncpa [#allocation3], 0  ;;  %s1058_s0 = inlined_call_operand.hbm [shape: f32[2,8,32], index: 0, kind: input, shape index: {}]   ;;  %s1059_s1 = inlined_call_operand.hbm [shape: bf16[32,96], index: 1, kind: input, shape index: {}]   ;;  %s1060_s2 = inlined_call_operand.hbm [shape: f32[1,96], index: 2, kind: input, shape index: {}]   ;;  %s1061_s3 = inlined_call_operand.hbm [shape: f32[2,8,32], index: 3, kind: output, shape index: {}]  }
   0x1   :  { %10 = vsyncpa [#allocation3 + $0x1], 0 }
   0x2   :  { %11 = vsyncpa [#allocation6], 0 }
   0x3   :  { %12 = vsyncpa [#allocation4], 0 }
   0x4   :  { %14 = vsyncpa [#allocation4 + $0x1], 0  ;;  %s817_s12 = smov 0   ;;  %s819_s13 = smov 0  }
   0x5   :  { %s821_s14 = smov 0   ;;  %s823_s15 = smov 0  }
   0x6 LB: > { %s838_s16 = sadd.s32 4294967295, %s785_s15   ;;  %s501_s17 = sadd.s32 4294967294, %s785_s15   ;;  %s785_s15 = sphi %s823_s15, %s1081_s15   ;;  %s781_s14 = sphi %s821_s14, %s1080_s14   ;;  %s777_s13 = sphi %s819_s13, %s1079_s13   ;;  %s773_s12 = sphi %s817_s12, %s1078_s12  }
   0x7   : > { %p40_p0 = scmp.ne.s32.totalorder %s777_s13, %s773_s12  ;;  %p1062_p1 = scmp.eq.s32.totalorder %s838_s16, 0 }
   0x8   : > { %p112_p3 = scmp.eq.s32.totalorder %s501_s17, 1  ;;  %p502_p5 = scmp.ge.s32.totalorder %s785_s15, 1 }
   0x9   : > { %p847_p4 = por %p1062_p1, %p40_p0  ;;  %p119_p7 = scmp.lt.s32.totalorder %s785_s15, 3 }
   0xa   : > { %p852_p6 = por %p112_p3, %p40_p0  ;;  %s787_s21 = smov [#allocation5]  }
   0xb   : > { %s1065_s18 = scalar_select %p847_p4, 1, 0 }
   0xc   : > { %s1066_s19 = scalar_select %p852_p6, 1, 0 }
   0xd   : > { %p857_p8 = pnand %p502_p5, %p119_p7  ;;  %s131_s22 = sshll.u32 %s787_s21, 4  ;;  %s861_s22 = int_to_ptr.vmem [resolvable:$true] %s131_s22 }
   0xe   : > { %s788_s24 = smov [#allocation7]   ;;  %s629_s28 = scalar_lea.hbm %s1059_s1, 256 }
   0xf   : > { %p562_p9 = pneg %p857_p8  ;;  %s145_s25 = sshll.u32 %s788_s24, 4  ;;  %s872_s25 = int_to_ptr.vmem [resolvable:$true] %s145_s25 }
  0x10   : > { %p630_p12 = scmp.ne.s32.totalorder %s1059_s1, %s629_s28  ;;  %p636_p5 = scmp.lt.u32.totalorder %s629_s28, %s1059_s1 }
  0x11   : > { %p868_p11 = pnand %p562_p9, %p1062_p1 }
  0x13   : > { %p631_p13 = pneg %p868_p11 }
  0x15   : > { %p632_p0 = pnand %p631_p13, %p630_p12 }
  0x17   : > { %p633_p3 = pneg %p632_p0 }
  0x19   : > { %p638_p7 = pnand %p636_p5, %p633_p3 }
  0x1b   : > { %641 = shalt.err (!%p638_p7)
}
  0x1c   : > { %s642_s6 = scalar_lea.vmem %s861_s22, 256  ;;  %p650_p2 = scmp.lt.s32.totalorder %s861_s22, %s861_s22 }
  0x1d   : > { %p643_p9 = scmp.ne.s32.totalorder %s861_s22, %s642_s6  ;;  %p651_p12 = scmp.lt.s32.totalorder %s642_s6, %s642_s6 }
  0x1f   : > { %p645_p10 = pnand %p643_p9, %p631_p13  ;;  %p652_p0 = por %p651_p12, %p650_p2 }
  0x21   : > { %p646_p1 = pneg %p645_p10 }
  0x23   : > { %p653_p6 = pnand %p652_p0, %p646_p1 }
  0x25   : > { %656 = shalt.err (!%p653_p6)
}
  0x26   : > { %s789_s7 = smov 64   ;;  %s790_s8 = smov 4  }
  0x27   : > { %565 = dma.hbm_to_vmem [thread:$0]  (!%p868_p11), %s1059_s1, 256, %s861_s22, [#allocation6], %s789_s7, %s789_s7, %s790_s8  }
  0x28   : > { %s657_s21 = scalar_lea.hbm %s1060_s2, 16 }
  0x29   : > { %p658_p2 = scmp.ne.s32.totalorder %s1060_s2, %s657_s21  ;;  %p664_p10 = scmp.lt.u32.totalorder %s657_s21, %s1060_s2 }
  0x2b   : > { %p660_p1 = pnand %p658_p2, %p631_p13 }
  0x2d   : > { %p661_p6 = pneg %p660_p1 }
  0x2f   : > { %p666_p3 = pnand %p664_p10, %p661_p6 }
  0x31   : > { %669 = shalt.err (!%p666_p3)
}
  0x32   : > { %s670_s22 = scalar_lea.vmem %s872_s25, 16  ;;  %s677_s29 = scalar_lea.vmem %s872_s25, 32 }
  0x33   : > { %p671_p5 = scmp.ne.s32.totalorder %s872_s25, %s670_s22  ;;  %p678_p12 = scmp.lt.s32.totalorder %s872_s25, %s872_s25 }
  0x34   : > { %p679_p0 = scmp.lt.s32.totalorder %s677_s29, %s670_s22 }
  0x35   : > { %p673_p7 = pnand %p671_p5, %p631_p13 }
  0x36   : > { %p680_p2 = por %p679_p0, %p678_p12 }
  0x37   : > { %p674_p9 = pneg %p673_p7 }
  0x39   : > { %p681_p1 = pnand %p680_p2, %p674_p9 }
  0x3b   : > { %684 = shalt.err (!%p681_p1)
}
  0x3c   : > { %568 = dma.hbm_to_vmem [thread:$0]  (!%p868_p11), %s1060_s2, 16, %s872_s25, [#allocation6]  }
  0x3d   : > { %s928_s5 = sadd.s32 1, %s785_s15   ;;  %s27_s23 = sadd.s32 1, %s781_s14 }
  0x3e   : > { %s24_s6 = ssub.s32 %s785_s15, %s928_s5  ;;  %p34_p13 = scmp.ne.s32.totalorder %s781_s14, %s777_s13 }
  0x3f   : > { %p25_p6 = scmp.eq.s32.totalorder %s24_s6, 0  ;;  %p35_p10 = scmp.eq.s32.totalorder %s785_s15, 0 }
  0x40   : > { %p1069_p3 = scmp.eq.s32.totalorder %s838_s16, 1  ;;  %p579_p7 = scmp.lt.s32.totalorder %s785_s15, 2 }
  0x41   : > { %s944_s8 = scalar_select %p25_p6, %s781_s14, %s27_s23  }
  0x42   : > { %p938_p5 = por %p1069_p3, %p34_p13  ;;  %p36_p9 = por %p35_p10, %p34_p13 }
  0x43   : > { %s156_s9 = sand.u32 1, %s781_s14   ;;  %s507_s25 = sshll.u32 %s785_s15, 7 }
  0x44   : > { %s1070_s7 = scalar_select %p938_p5, 1, 0 }
  0x45   : > { %s506_s10 = sshll.u32 %s156_s9, 3  ;;  %s951_s21 = scalar_lea.hbm %s1058_s0, %s507_s25 }
  0x46   : > { %s160_s24 = scalar_lea.vmem [#allocation2], %s506_s10  ;;  %p955_p11 = pnand %p579_p7, %p36_p9 }
  0x47   : > { %s167_s26 = sshll.u32 %s160_s24, 4  ;;  %s157_s28 = scalar_lea.sflag [#allocation3], %s156_s9  ;;  %s953_s26 = int_to_ptr.vmem [resolvable:$true] %s167_s26 }
  0x48   : > { %s685_s22 = scalar_lea.hbm %s951_s21, 128  ;;  %p687_p0 = pneg %p955_p11 }
  0x49   : > { %p686_p12 = scmp.ne.s32.totalorder %s951_s21, %s685_s22  ;;  %s690_s4 = scalar_lea.hbm %s1058_s0, 256 }
  0x4a   : > { %p691_p13 = scmp.lt.u32.totalorder %s951_s21, %s1058_s0  ;;  %p692_p6 = scmp.lt.u32.totalorder %s690_s4, %s685_s22 }
  0x4b   : > { %p688_p2 = pnand %p687_p0, %p686_p12  ;;  %p694_p3 = scmp.lt.u32.totalorder %s685_s22, %s951_s21 }
  0x4c   : > { %p693_p10 = por %p692_p6, %p691_p13 }
  0x4d   : > { %p689_p1 = pneg %p688_p2 }
  0x4e   : > { %p695_p7 = por %p694_p3, %p693_p10 }
  0x50   : > { %p696_p9 = pnand %p695_p7, %p689_p1 }
  0x52   : > { %699 = shalt.err (!%p696_p9)
}
  0x53   : > { %s700_s9 = scalar_lea.vmem %s953_s26, 128  ;;  %s791_s10 = smov [#allocation2]  }
  0x54   : > { %p701_p12 = scmp.ne.s32.totalorder %s953_s26, %s700_s9  ;;  %s705_s25 = sshll.u32 %s791_s10, 4  ;;  %s706_s25 = int_to_ptr.vmem [resolvable:$false] %s705_s25 }
  0x55   : > { %s707_s11 = scalar_lea.vmem %s706_s25, 256  ;;  %p708_p4 = scmp.lt.s32.totalorder %s953_s26, %s706_s25 }
  0x56   : > { %p703_p2 = pnand %p701_p12, %p687_p0  ;;  %p709_p13 = scmp.lt.s32.totalorder %s707_s11, %s700_s9 }
  0x58   : > { %p704_p5 = pneg %p703_p2  ;;  %p710_p6 = por %p709_p13, %p708_p4 }
  0x5a   : > { %p711_p10 = pnand %p710_p6, %p704_p5 }
  0x5c   : > { %714 = shalt.err (!%p711_p10)
}
  0x5d   : > { %572 = dma.hbm_to_vmem [thread:$0]  (!%p955_p11), %s951_s21, 128, %s953_s26, %s157_s28  }
  0x5e   : > { %176 = sbr.rel (%p857_p8) target bundleno = 1209 (0x4b9), region = 32  ;;  %s987_s17 = sand.u32 (!%p857_p8), 1, %s777_s13  }
  0x5f   : > { %s509_s24 = sshll.u32 (!%p857_p8), %s987_s17, 3  ;;  %s179_s22 = scalar_lea.sflag (!%p857_p8), [#allocation3], %s987_s17 }
  0x60   : > { %s182_s29 = scalar_lea.vmem (!%p857_p8), [#allocation2], %s509_s24  ;;  %p1072_p4 = scmp.ne.s32.totalorder (!%p857_p8), %s1065_s18, 0 }
  0x65   : > { %760 = dma.done.wait (%p1072_p4), %s179_s22, 128  }
  0x66   : > { %762 = vsyncadd (%p1072_p4), %s179_s22, 4294967168  ;;  %p1073_p5 = scmp.eq.s32.totalorder %s838_s16, 0 }
  0x68   : > { %764 = dma.done.wait (%p1073_p5), [#allocation6], 272   ;;  %p1074_p8 = pmov %p1073_p5 }
  0x69   : > { %v792_v0 = vmov 0.0   ;;  %vm793_vm0 = vmmov 0   ;;  %v623_v1 = vld [vmem:[#allocation5] sm:$0xff]   ;;  %v624_v2 = vld [vmem:[#allocation5 + $0x8] sm:$0xff]   ;;  %v214_v3 = vld [vmem:[%s182_s29] sm:$0xff]  ;;  %vm239_vm1 = vcmask 261120  }
  0x6a   : > { %766 = vsyncadd (%p1074_p8), [#allocation6], 4294967024  ;;  %530 = vmatprep.subr.bf16.mxu0 %v792_v0  ;;  %534 = vmatprep.mubr.msk.bf16.mxu0 %vm793_vm0, %v792_v0  ;;  %v215_v4 = vpack.c.bf16 %v214_v3, %v214_v3  ;;  %v513_v5 = vld [vmem:[#allocation7] ss:$0 sm:$0xff]  ;;  %s794_s18 = smov 96   ;;  %vm335_vm2 = vcmask 64512  }
  0x6b   : > { %538 = vmatprep.subr.bf16.mxu1 %v792_v0  ;;  %540 = vmatprep.mubr.msk.bf16.mxu1 %vm793_vm0, %v792_v0  ;;  %s795_s20 = smov 64   ;;  %vm353_vm3 = vcmask 1043456   ;;  %s520_s21 = sshll.u32 %s838_s16, 7 }
  0x6c   : > { %531 = vmatpush3.bf16.msra.mxu0 %v623_v1  ;;  %s212_s26 = scalar_lea.vmem [#allocation8], %s509_s24  ;;  %s1013_s4 = scalar_lea.hbm %s1061_s3, %s520_s21 }
  0x6d   : > { %532 = vmatprep.subr.bf16.mxu0 %v792_v0  ;;  %s412_s27 = sshll.u32 %s212_s26, 4  ;;  %s399_s23 = scalar_lea.sflag [#allocation4], %s987_s17  ;;  %s1015_s27 = int_to_ptr.vmem [resolvable:$true] %s412_s27 }
  0x6e   : > { %s715_s16 = scalar_lea.vmem %s1015_s27, 128  ;;  %p1075_p0 = scmp.ne.s32.totalorder %s1070_s7, 0 }
  0x6f   : > { %p716_p11 = scmp.ne.s32.totalorder %s1015_s27, %s715_s16  ;;  %s796_s6 = smov [#allocation8]  }
  0x70   : > { %533 = vmatpush3.bf16.msra.mxu0 %v624_v2  ;;  %s719_s9 = sshll.u32 %s796_s6, 4  ;;  %s720_s9 = int_to_ptr.vmem [resolvable:$false] %s719_s9 }
  0x71   : > { %544 = vmatprep.subr.bf16.mxu0 %v792_v0  ;;  %p717_p1 = pnand %p716_p11, %p1075_p0  ;;  %s721_s10 = scalar_lea.vmem %s720_s9, 256 }
  0x72   : > { %p722_p7 = scmp.lt.s32.totalorder %s1015_s27, %s720_s9  ;;  %p723_p9 = scmp.lt.s32.totalorder %s721_s10, %s715_s16 }
  0x73   : > { %535 = vmatmul.mubr.msk.bf16.vlgmr.msra.gmra.mrb[0].mxu0 %vm239_vm1, %v215_v4  ;;  %p718_p3 = pneg %p717_p1 }
  0x74   : > { %546 = vmatprep.mubr.msk.bf16.mxu0 %vm793_vm0, %v792_v0  ;;  %p724_p12 = por %p723_p9, %p722_p7 }
  0x76   : > { %p725_p2 = pnand %p724_p12, %p718_p3 }
 0x146   : > { %v277_v6 = vpop.f32.mrb[0].mxu0 }
 0x147   : > { %v278_v7 = vadd.f32 %v513_v5, %v277_v6  ;;  %v536_v8 = vpop.f32.mrb[1].mxu0 }
 0x148   : > { %v280_v9 = vpop.f32.mrb[2].mxu0 }
 0x149   : > { %v537_v10 = vpop.f32.mrb[3].mxu0  ;;  %v285_v11 = vpack.c.bf16 %v278_v7, %v278_v7  ;;  %v283_v14 = vmul.f32 0.125, %v278_v7 }
 0x14b   : > { %287 = vrot.lane.b32.xlu0 %v285_v11, %s794_s18  ;;  %v284_v15 = vpack.c.bf16 %v283_v14, %v283_v14 }
 0x1bd   : > { %v288_v12 = vpop.permute.xlu0 %287 }
 0x1be   : > { %v293_v13 = vsel %vm239_vm1, %v288_v12, 0 }
 0x1bf   : > { %539 = vmatpush3.bf16.xpose.msra.mxu1 %v293_v13 }
 0x1c6   : > { %541 = vmatmul.mubr.msk.bf16.vlgmr.msra.gmra.mrb[0].mxu1 %vm239_vm1, %v284_v15 }
 0x299   : > { %v329_v16 = vpop.f32.mrb[0].mxu1 }
 0x29a   : > { %v542_v17 = vpop.f32.mrb[1].mxu1  ;;  %v336_v18 = vsel %vm335_vm2, %v329_v16, -inf }
 0x29b   : > { %337 = vmax.xlane.f32.xlu0 %v336_v18  ;;  %v332_v19 = vpop.f32.mrb[2].mxu1 }
 0x29c   : > { %v543_v20 = vpop.f32.mrb[3].mxu1 }
 0x328   : > { %v338_v21 = vpop.xlane.xlu0 %337 }
 0x329   : > { %v339_v22 = vsub.f32 %v329_v16, %v338_v21 }
 0x32b   : > { %v340_v23 = vmul.f32 1.442695, %v339_v22 }
 0x32d   : > { %625 = vpow2.f32 %v340_v23 }
 0x337   : > { %v626_v24 = vpop.eup %625 }
 0x338   : > { %v342_v25 = vsel %vm335_vm2, %v626_v24, 0.0 }
 0x339   : > { %343 = vadd.xlane.f32.xlu1 %v342_v25 }
 0x34a   : > { %348 = vrot.lane.b32.xlu1 %v285_v11, %s795_s20 }
 0x3c6   : > { %v344_v26 = vpop.xlane.xlu1 %343 }
 0x3c7   : > { %627 = vrcp.f32 %v344_v26 }
 0x3ca   : > { %v349_v27 = vpop.permute.xlu1 %348 }
 0x3cb   : > { %v355_v28 = vsel %vm353_vm3, %v349_v27, 0 }
 0x3cc   : > { %545 = vmatpush3.bf16.msra.mxu0 %v355_v28 }
 0x3d1   : > { %v628_v29 = vpop.eup %627 }
 0x3d2   : > { %v346_v30 = vmul.f32 %v628_v29, %v626_v24 }
 0x3d4   : > { %v347_v31 = vpack.c.bf16 %v346_v30, %v346_v30 }
 0x3d6   : > { %547 = vmatmul.mubr.msk.bf16.vlgmr.msra.gmra.mrb[4].mxu0 %vm335_vm2, %v347_v31 }
 0x4a9   : > { %v391_v32 = vpop.f32.mrb[4].mxu0 }
 0x4aa   : > { %397 = vst.msk [vmem:[%s212_s26] sm:$0xff] %vm239_vm1, %v391_v32  ;;  %v548_v33 = vpop.f32.mrb[5].mxu0 }
 0x4ab   : > { %v394_v34 = vpop.f32.mrb[6].mxu0 }
 0x4ac   : > { %728 = shalt.err (!%p725_p2)
}
 0x4ad   : > { %s729_s25 = scalar_lea.hbm %s1013_s4, 128  ;;  %s733_s24 = scalar_lea.hbm %s1061_s3, 256 }
 0x4ae   : > { %p730_p13 = scmp.ne.s32.totalorder %s1013_s4, %s729_s25  ;;  %p734_p4 = scmp.lt.u32.totalorder %s1013_s4, %s1061_s3 }
 0x4af   : > { %p735_p5 = scmp.lt.u32.totalorder %s733_s24, %s729_s25  ;;  %p737_p11 = scmp.lt.u32.totalorder %s729_s25, %s1013_s4 }
 0x4b0   : > { %p731_p6 = pnand %p730_p13, %p1075_p0 }
 0x4b1   : > { %p736_p8 = por %p735_p5, %p734_p4 }
 0x4b2   : > { %p732_p10 = pneg %p731_p6 }
 0x4b3   : > { %p738_p1 = por %p737_p11, %p736_p8 }
 0x4b5   : > { %p739_p3 = pnand %p738_p1, %p732_p10 }
 0x4b7   : > { %742 = shalt.err (!%p739_p3)
}
 0x4b8   : > { %560 = dma.vmem_to_hbm [thread:$0]  (%p1075_p0), %s1015_s27, 128, %s1013_s4, %s399_s23   ;;  %v549_v35 = vpop.f32.mrb[7].mxu0 }
 0x4b9 PF: > { %s424_s18 = sand.u32 1, %s773_s12   ;;  %p1076_p7 = scmp.ne.s32.totalorder %s1066_s19, 0 }
 0x4ba   : > { %p1077_p9 = scmp.ge.s32.totalorder %s785_s15, 2  ;;  %s425_s20 = scalar_lea.sflag [#allocation4], %s424_s18 }
 0x4bc   : > { %p574_p12 = pnand %p1077_p9, %p1076_p7 }
 0x4be   : > { %768 = dma.done.wait (!%p574_p12), %s425_s20, 128  }
 0x4bf   : > { %770 = vsyncadd (!%p574_p12), %s425_s20, 4294967168  ;;  %p17_p2 = scmp.ge.s32.totalorder %s928_s5, 4   ;;  %s1078_s12 = smov %s777_s13 }
 0x4c0   : > { %s1079_s13 = smov %s781_s14  ;;  %s1080_s14 = smov %s944_s8 }
 0x4c1   : > { %s1081_s15 = smov %s928_s5  ;;  %19 = sbr.rel (!%p17_p2) target bundleno = 6 (0x6), region = 85 }
 0x4c8   :  { %430 = vsyncpa [#allocation3], 1 }
 0x4c9   :  { %432 = vsyncpa [#allocation3 + $0x1], 1 }
 0x4ca   :  { %433 = vsyncpa [#allocation6], 1 }
 0x4cb   :  { %434 = vsyncpa [#allocation4], 1 }
 0x4cc   :  { %436 = vsyncpa [#allocation4 + $0x1], 1 }

</bundles_post_ra>
